<compile_context>
chip_gen: v7x
topology: tpu7x:2x2x1
jax: 0.10.0
libtpu: 0.0.40
codegen_flags: <defaults>
</compile_context>

<pallas_src>
import math

import jax
import jax.numpy as jnp
from jax.experimental import pallas as pl
from jax.experimental.pallas import tpu as pltpu


_LANE = 128
_MAX_COLS = 4096          # lane-dense column cap (multiple of 128)
_MIN_GRID_STEPS = 4       # target >= 4 grid steps so DMA in/out overlap


def _copy_kernel(x_ref, o_ref):
    # Identity copy of the current tile (the entire "compute" of a view op).
    o_ref[...] = x_ref[...]


def _device_tile_config():
    """Per-generation (max_tile_bytes, vmem_limit_bytes)."""
    kind = ""
    try:
        kind = jax.devices()[0].device_kind.lower()
    except Exception:
        pass
    if "v7" in kind:
        # 6 MiB tiles -> ~24 MiB double-buffered pipeline (in + out); stays
        # under the 32 MiB scoped default / 64 MiB physical per-TC VMEM.
        return 6 * 1024 * 1024, 32 * 1024 * 1024
    if "v6" in kind:
        # 4 MiB tiles -> ~16 MiB pipeline; 128 MiB physical VMEM, so raise the
        # scoped limit well past the footprint.
        return 4 * 1024 * 1024, 48 * 1024 * 1024
    # v5e and unknown chips: 2 MiB tiles keep the ~8 MiB pipeline inside the
    # 16 MiB scoped VMEM default without touching vmem_limit_bytes.
    return 2 * 1024 * 1024, None


def _sublane_multiple(dtype):
    """Dtype-native sublane packing: 8 rows f32, 16 bf16, 32 int8/fp8."""
    itemsize = jnp.dtype(dtype).itemsize
    return max(8, 32 // max(1, itemsize))


def _resolve_shape(total, shape):
    """torch.view-style shape resolution with strict validation."""
    shape = list(shape)
    if shape.count(-1) > 1:
        raise ValueError("only one dimension may be -1")
    if -1 in shape:
        known = 1
        for s in shape:
            if s != -1:
                known *= s
        if known == 0 or total % known != 0:
            raise ValueError(
                f"shape {tuple(shape)} is invalid for input of size {total}")
        shape[shape.index(-1)] = total // known
    if math.prod(shape) != total:
        raise ValueError(
            f"shape {tuple(shape)} is invalid for input of size {total}")
    return tuple(shape)


def _pick_cols(total, min_rows):
    """Largest multiple of 128 dividing `total`, preferring one that leaves
    at least `min_rows` rows (enough grid steps to pipeline / core-split)."""
    widest = None
    c = _MAX_COLS
    while c >= _LANE:
        if total % c == 0:
            if widest is None:
                widest = c
            if total // c >= min_rows:
                return c
        c -= _LANE
    return widest                     # None => ragged (total % 128 != 0)


def _pick_tile_rows(rows, cols, itemsize, max_tile_bytes, sub):
    """Tile rows: sublane-aligned, within the byte budget, >= ~4 grid steps,
    exact divisor of rows when possible, preferring an even step count."""
    cap_budget = max(1, max_tile_bytes // (cols * itemsize))
    cap_steps = -(-rows // _MIN_GRID_STEPS)        # ceil(rows / MIN_GRID_STEPS)
    cap = min(cap_budget, cap_steps)
    if cap < sub:
        if rows <= sub:
            return rows               # tiny array: single full block is legal
        # Minimum aligned tile; may slightly exceed the step/byte caps, which
        # is acceptable for arrays this small.
        return sub
    cap = (cap // sub) * sub
    d = cap
    while d >= sub:
        if rows % d == 0:             # exact division: no masked partial block
            steps = rows // d
            # v7x has 2 TCs on the "parallel" axis: make the step count even
            # when it costs at most a 2x smaller tile.
            if steps % 2 == 1 and d % (2 * sub) == 0:
                d //= 2
            return d
        d -= sub
    return cap                        # no aligned divisor: masked last block


def _pallas_copy_2d(x2d, tile_rows, vmem_limit_bytes=None, donate=False):
    rows, cols = x2d.shape
    grid = (pl.cdiv(rows, tile_rows),)
    nbytes = x2d.size * jnp.dtype(x2d.dtype).itemsize
    return pl.pallas_call(
        _copy_kernel,
        out_shape=jax.ShapeDtypeStruct((rows, cols), x2d.dtype),
        grid_spec=pltpu.PrefetchScalarGridSpec(
            num_scalar_prefetch=0,
            grid=grid,
            in_specs=[pl.BlockSpec((tile_rows, cols), lambda i: (i, 0))],
            out_specs=pl.BlockSpec((tile_rows, cols), lambda i: (i, 0)),
        ),
        compiler_params=pltpu.CompilerParams(
            # On v7x (2 TCs/chip) this shards the copy grid across both cores;
            # on v5e/v6e it is a no-op.
            dimension_semantics=("parallel",),
            vmem_limit_bytes=vmem_limit_bytes,
        ),
        cost_estimate=pl.CostEstimate(
            flops=0, transcendentals=0, bytes_accessed=2 * nbytes),
        # donate=True mirrors .view aliasing: output reuses the input HBM
        # buffer, halving HBM footprint for large activations.
        input_output_aliases=({0: 0} if donate else {}),
    )(x2d)


def reshape_forward(x, shape, materialize=True, max_tile_bytes=None,
                    donate=False):
    """Equivalent of `_Reshape(shape)(x)` == x.view(shape).

    materialize=False is the production-correct zero-cost path (metadata-only
    reshape, no HBM traffic).  materialize=True routes the contiguous buffer
    through the Pallas identity-copy kernel.
    """
    total = x.size
    out_shape = _resolve_shape(total, shape)

    if not materialize:
        return jnp.reshape(x, out_shape)

    itemsize = jnp.dtype(x.dtype).itemsize
    sub = _sublane_multiple(x.dtype)
    cols = _pick_cols(total, min_rows=_MIN_GRID_STEPS * sub)
    if cols is None:
        # TODO(synk): element count not a multiple of 128 — a materialized copy
        # would need lane-masked partial stores; since .view is metadata-only,
        # use the zero-cost reshape instead of a degenerate one-block kernel.
        return jnp.reshape(x, out_shape)

    dev_tile_bytes, vmem_limit = _device_tile_config()
    if max_tile_bytes is None:
        max_tile_bytes = dev_tile_bytes

    rows = total // cols
    tile_rows = _pick_tile_rows(rows, cols, itemsize, max_tile_bytes, sub)

    flat = x.reshape(rows, cols)
    copied = _pallas_copy_2d(flat, tile_rows,
                             vmem_limit_bytes=vmem_limit, donate=donate)
    return copied.reshape(out_shape)


if __name__ == "__main__":
    key = jax.random.PRNGKey(0)
    k0, k1, k2 = jax.random.split(key, 3)

    # 1) Small NCHW feature map consistent with a conv VAE: flatten per sample.
    #    Tiny array (8 KiB) -> single full block is allowed and optimal.
    x = jax.random.normal(k0, (2, 4, 16, 16), dtype=jnp.float32)
    ref = x.reshape(2, 4 * 16 * 16)
    out = jax.block_until_ready(reshape_forward(x, (2, -1)))
    assert out.shape == ref.shape and out.dtype == ref.dtype
    assert bool(jnp.array_equal(out, ref))

    # 2) f32 array large enough to exercise the multi-step pipelined path:
    #    cols=2560, rows=32, tile_rows=8 -> grid of 4 even steps, no masked tail.
    x2 = jax.random.normal(k1, (2, 5, 64, 128), dtype=jnp.float32)
    ref2 = x2.reshape(10, 8192)
    out2 = jax.block_until_ready(reshape_forward(x2, (10, -1)))
    assert out2.shape == ref2.shape and bool(jnp.array_equal(out2, ref2))

    # 3) bf16 path exercising dtype-native sublane rounding (tile_rows=16):
    #    cols=1024, rows=64 -> grid of 4 even steps.
    x3 = jax.random.normal(k2, (4, 8, 32, 64), dtype=jnp.bfloat16)
    ref3 = x3.reshape(32, 2048)
    out3 = jax.block_until_ready(reshape_forward(x3, (32, -1)))
    assert out3.shape == ref3.shape and out3.dtype == ref3.dtype
    assert bool(jnp.array_equal(out3, ref3))

    # 4) Ragged element count (not a multiple of 128) -> zero-cost reshape path.
    x4 = jnp.arange(2 * 3 * 5 * 7, dtype=jnp.float32).reshape(2, 3, 5, 7)
    out4 = jax.block_until_ready(reshape_forward(x4, (6, -1)))
    assert bool(jnp.array_equal(out4, x4.reshape(6, 35)))

    # 5) Production zero-cost path (metadata-only, no kernel).
    out5 = jax.block_until_ready(reshape_forward(x, (2, -1), materialize=False))
    assert bool(jnp.array_equal(out5, ref))

    print("KERNEL_OK")
</pallas_src>

<mosaic_0001>
module attributes {stable_mosaic.version = 11 : i64} {
  func.func @_copy_kernel(%arg0: i32, %arg1: memref<1x2048xf32, #tpu.memory_space<vmem>>, %arg2: memref<1x2048xf32, #tpu.memory_space<vmem>>) attributes {dimension_semantics = [#tpu.dimension_semantics<parallel>], iteration_bounds = array<i64: 1>, scalar_prefetch = 0 : i64, scratch_operands = 0 : i64, tpu.core_type = #tpu.core_type<tc>, window_params = [{transform_indices = @transform_0, window_bounds = array<i64: 1, 2048>}, {transform_indices = @transform_1, window_bounds = array<i64: 1, 2048>}]} {
    %c0 = arith.constant 0 : index
    %c0_0 = arith.constant 0 : index
    %0 = vector.load %arg1[%c0, %c0_0] : memref<1x2048xf32, #tpu.memory_space<vmem>>, vector<1x2048xf32>
    %c0_1 = arith.constant 0 : index
    %c0_2 = arith.constant 0 : index
    %1 = vector.load %arg2[%c0_1, %c0_2] : memref<1x2048xf32, #tpu.memory_space<vmem>>, vector<1x2048xf32>
    tpu.vector_store %arg2[%c0_1, %c0_2], %0 {strides = array<i32>} : memref<1x2048xf32, #tpu.memory_space<vmem>>, vector<1x2048xf32>,
    return
  }
  func.func @transform_0(%arg0: i32) -> (i32, i32) {
    %c0_i32 = arith.constant 0 : i32
    %c0_i32_0 = arith.constant 0 : i32
    return %arg0, %c0_i32 : i32, i32
  }
  func.func @transform_1(%arg0: i32) -> (i32, i32) {
    %c0_i32 = arith.constant 0 : i32
    %c0_i32_0 = arith.constant 0 : i32
    return %arg0, %c0_i32 : i32, i32
  }
}

</mosaic_0001>

<bundles_post_ra>
// kernel: tpu_custom_call.1
= control target key start
LH: loop header
LB: loop body
LE: loop exit
PB: predicated region body
PF: predicated region fallthrough
CT: control target
= control target key end

     0   :  { %6 = vsyncpa [#allocation3], 0  ;;  %s126_s0 = inlined_call_operand.hbm [shape: f32[1,2048], index: 0, kind: input, shape index: {}]   ;;  %s127_s1 = inlined_call_operand.hbm [shape: f32[1,2048], index: 1, kind: output, shape index: {}]  }
   0x1   :  { %7 = vsyncpa [#allocation4], 0  ;;  %s90_s6 = smov [#allocation2]   ;;  %s42_s10 = scalar_lea.hbm %s126_s0, 256 }
   0x2   :  { %s14_s7 = sshll.u32 %s90_s6, 4  ;;  %p43_p0 = scmp.ne.s32.totalorder %s126_s0, %s42_s10  ;;  %s15_s7 = int_to_ptr.vmem [resolvable:$true] %s14_s7 }
   0x3   :  { %p46_p1 = scmp.lt.u32.totalorder %s42_s10, %s126_s0 }
   0x5   :  { %p48_p2 = pnand %p46_p1, %p43_p0 }
   0x7   :  { %51 = shalt.err (!%p48_p2)
}
   0x8   :  { %s52_s15 = scalar_lea.vmem %s15_s7, 256  ;;  %p57_p4 = scmp.lt.s32.totalorder %s15_s7, %s15_s7 }
   0x9   :  { %p53_p3 = scmp.ne.s32.totalorder %s15_s7, %s52_s15  ;;  %p58_p5 = scmp.lt.s32.totalorder %s52_s15, %s52_s15 }
   0xb   :  { %p59_p6 = por %p58_p5, %p57_p4 }
   0xd   :  { %p60_p7 = pnand %p59_p6, %p53_p3 }
   0xf   :  { %63 = shalt.err (!%p60_p7)
}
  0x10   :  { %17 = dma.hbm_to_vmem [thread:$0]  %s126_s0, 256, %s15_s7, [#allocation3]  }
  0x11   :  { %86 = dma.done.wait [#allocation3], 256  }
  0x12   :  { %87 = vsyncadd [#allocation3], 4294967040  ;;  %s91_s18 = smov [#allocation5]   ;;  %v21_v0 = vld [vmem:[#allocation2] sm:$0xff]  ;;  %v22_v1 = vld [vmem:[#allocation2 + $0x8] sm:$0xff] }
  0x13   :  { %s31_s19 = sshll.u32 %s91_s18, 4  ;;  %23 = vst [vmem:[#allocation5] sm:$0xff] %v21_v0  ;;  %24 = vst [vmem:[#allocation5 + $0x8] sm:$0xff] %v22_v1  ;;  %s32_s19 = int_to_ptr.vmem [resolvable:$true] %s31_s19 }
  0x14   :  { %s64_s20 = scalar_lea.vmem %s32_s19, 256  ;;  %p69_p9 = scmp.lt.s32.totalorder %s32_s19, %s32_s19 }
  0x15   :  { %p65_p8 = scmp.ne.s32.totalorder %s32_s19, %s64_s20  ;;  %p70_p10 = scmp.lt.s32.totalorder %s64_s20, %s64_s20 }
  0x17   :  { %p71_p11 = por %p70_p10, %p69_p9 }
  0x19   :  { %p72_p12 = pnand %p71_p11, %p65_p8 }
  0x1b   :  { %75 = shalt.err (!%p72_p12)
}
  0x1c   :  { %s76_s0 = scalar_lea.hbm %s127_s1, 256 }
  0x1d   :  { %p77_p13 = scmp.ne.s32.totalorder %s127_s1, %s76_s0  ;;  %p80_p0 = scmp.lt.u32.totalorder %s76_s0, %s127_s1 }
  0x1f   :  { %p82_p1 = pnand %p80_p0, %p77_p13 }
  0x21   :  { %85 = shalt.err (!%p82_p1)
}
  0x22   :  { %34 = dma.vmem_to_hbm [thread:$0]  %s32_s19, 256, %s127_s1, [#allocation4]  }
  0x23   :  { %88 = dma.done.wait [#allocation4], 256  }
  0x24   :  { %89 = vsyncadd [#allocation4], 4294967040 }
  0x25   :  { %38 = vsyncpa [#allocation3], 1 }
  0x26   :  { %39 = vsyncpa [#allocation4], 1 }

</bundles_post_ra>
